<compile_context>
chip_gen: v7x
topology: tpu7x:2x2x1
jax: 0.10.0
libtpu: 0.0.40
codegen_flags: <defaults>
</compile_context>

<pallas_src>
import math

import jax
import jax.numpy as jnp
from jax.experimental import pallas as pl
from jax.experimental.pallas import tpu as pltpu


def _copy_kernel(x_ref, o_ref):
    # Lane-aligned, unmasked vector copy.  The flatten itself already happened
    # as a free metadata reshape in the wrapper; this kernel only exists as an
    # optional fusion anchor and moves bytes HBM->VMEM->HBM at roofline.
    o_ref[...] = x_ref[...]


def _resolve_dims(ndim: int, start_dim: int, end_dim: int):
    s = start_dim if start_dim >= 0 else start_dim + ndim
    e = end_dim if end_dim >= 0 else end_dim + ndim
    if not (0 <= s <= e < ndim):
        raise ValueError(f"invalid flatten dims for ndim={ndim}: "
                         f"{start_dim}, {end_dim}")
    return s, e


def _lane_dense_2d(total: int, natural: tuple) -> tuple:
    """Factor `total` elements into (rows, lanes) with lanes a multiple of 128.

    Decoupled from the logical out_shape so the kernel never sees a narrow
    (<128) trailing dim (masked vst.msk partial stores) nor a degenerate
    (1, huge-with-tail) view.  Falls back to the natural 2-D view if no
    128-multiple divides the total (Pallas then masks the ragged edge).
    """
    for lanes in (2048, 1024, 512, 256, 128):
        if total % lanes == 0:
            return (total // lanes, lanes)
    return natural


def _choose_tiles(M: int, N: int, dtype) -> tuple:
    """Dtype-aware tile sizes under a fixed byte budget (~2 MiB per tile)."""
    itemsize = jnp.dtype(dtype).itemsize
    sub_unit = {1: 32, 2: 16}.get(itemsize, 8)          # packed-dtype sublane unit
    budget_bytes = 2 * 1024 * 1024                       # 2 MiB/tile -> 8 MiB total

    # Lane tile: full dim if it fits, else a multiple of 128 capped at 2048.
    tile_n = N if N <= 2048 else min((N // 128) * 128, 2048)
    # Sublane tile: fill the byte budget in multiples of sub_unit.
    max_m = max(budget_bytes // max(tile_n * itemsize, 1), sub_unit)
    tile_m = M if M <= max_m else max((max_m // sub_unit) * sub_unit, sub_unit)
    return tile_m, tile_n


def _pallas_identity_copy(y2d: jax.Array) -> jax.Array:
    """Tiled, pipelined, lane-dense pass-through copy of a 2-D array."""
    M, N = y2d.shape
    tile_m, tile_n = _choose_tiles(M, N, y2d.dtype)
    grid = (pl.cdiv(M, tile_m), pl.cdiv(N, tile_n))
    return pl.pallas_call(
        _copy_kernel,
        out_shape=jax.ShapeDtypeStruct((M, N), y2d.dtype),
        grid=grid,
        in_specs=[pl.BlockSpec((tile_m, tile_n), lambda i, j: (i, j))],
        out_specs=pl.BlockSpec((tile_m, tile_n), lambda i, j: (i, j)),
        # Reuse the input HBM buffer for the output: halves peak HBM footprint
        # when the input is donatable (e.g. under jit with donated args).
        input_output_aliases={0: 0},
        compiler_params=pltpu.CompilerParams(
            dimension_semantics=("parallel", "parallel"),
        ),
    )(y2d)


def flatten(x: jax.Array, start_dim: int = 1, end_dim: int = -1,
            use_kernel: bool = False) -> jax.Array:
    """torch.flatten(x, start_dim, end_dim) semantics (row-major)."""
    s, e = _resolve_dims(x.ndim, start_dim, end_dim)
    flat = math.prod(x.shape[s:e + 1])
    out_shape = x.shape[:s] + (flat,) + x.shape[e + 1:]

    # The actual flatten: a free, metadata-only reshape on a contiguous
    # row-major array — identical to torch.flatten.  Default production path.
    y = jnp.reshape(x, out_shape)
    if not use_kernel or y.size == 0:
        return y

    # Optional Pallas pass-through copy (fusion anchor only).
    total = y.size
    last = out_shape[-1] if out_shape else total
    lead = max(total // max(last, 1), 1)
    rows, lanes = _lane_dense_2d(total, (lead, last))
    y2d = jnp.reshape(y, (rows, lanes))       # free metadata view
    out2d = _pallas_identity_copy(y2d)
    return jnp.reshape(out2d, out_shape)      # free metadata view


class Flatten:
    """Mirror of the PyTorch nn.Module (no parameters)."""

    def __init__(self, start_dim: int = 1, end_dim: int = -1):
        self.start_dim = start_dim
        self.end_dim = end_dim

    def __call__(self, x: jax.Array, use_kernel: bool = False) -> jax.Array:
        return flatten(x, self.start_dim, self.end_dim, use_kernel=use_kernel)

    def extra_repr(self) -> str:
        return f"start_dim={self.start_dim}, end_dim={self.end_dim}"


if __name__ == "__main__":
    key = jax.random.PRNGKey(0)
    # NCHW input, small shapes: batch=2, channels=4, spatial=16x16.
    x = jax.random.normal(key, (2, 4, 16, 16), dtype=jnp.float32)
    y_ref = jnp.reshape(x, (2, 4 * 16 * 16))

    mod = Flatten(start_dim=1, end_dim=-1)

    # Default (recommended) path: free metadata reshape, no kernel.
    y_fast = jax.block_until_ready(mod(x))
    assert y_fast.shape == (2, 1024) and y_fast.dtype == x.dtype
    assert bool(jnp.array_equal(y_fast, y_ref)), "mismatch (fast path)"

    # Exercise the Pallas pass-through copy once (fusion-anchor path).
    y_kernel = jax.block_until_ready(mod(x, use_kernel=True))
    assert y_kernel.shape == (2, 1024) and y_kernel.dtype == x.dtype
    assert bool(jnp.array_equal(y_kernel, y_ref)), "mismatch (kernel path)"

    print("KERNEL_OK")
</pallas_src>

<mosaic_0001>
module attributes {stable_mosaic.version = 11 : i64} {
  func.func @_copy_kernel(%arg0: i32, %arg1: i32, %arg2: memref<1x2048xf32, #tpu.memory_space<vmem>>, %arg3: memref<1x2048xf32, #tpu.memory_space<vmem>>) attributes {dimension_semantics = [#tpu.dimension_semantics<parallel>, #tpu.dimension_semantics<parallel>], iteration_bounds = array<i64: 1, 1>, scalar_prefetch = 0 : i64, scratch_operands = 0 : i64, tpu.core_type = #tpu.core_type<tc>, window_params = [{transform_indices = @transform_0, window_bounds = array<i64: 1, 2048>}, {transform_indices = @transform_1, window_bounds = array<i64: 1, 2048>}]} {
    %c0 = arith.constant 0 : index
    %c0_0 = arith.constant 0 : index
    %0 = vector.load %arg2[%c0, %c0_0] : memref<1x2048xf32, #tpu.memory_space<vmem>>, vector<1x2048xf32>
    %c0_1 = arith.constant 0 : index
    %c0_2 = arith.constant 0 : index
    %1 = vector.load %arg3[%c0_1, %c0_2] : memref<1x2048xf32, #tpu.memory_space<vmem>>, vector<1x2048xf32>
    tpu.vector_store %arg3[%c0_1, %c0_2], %0 {strides = array<i32>} : memref<1x2048xf32, #tpu.memory_space<vmem>>, vector<1x2048xf32>,
    return
  }
  func.func @transform_0(%arg0: i32, %arg1: i32) -> (i32, i32) {
    %c0_i32 = arith.constant 0 : i32
    return %arg0, %arg1 : i32, i32
  }
  func.func @transform_1(%arg0: i32, %arg1: i32) -> (i32, i32) {
    %c0_i32 = arith.constant 0 : i32
    return %arg0, %arg1 : i32, i32
  }
}

</mosaic_0001>

<bundles_post_ra>
// kernel: tpu_custom_call.1
= control target key start
LH: loop header
LB: loop body
LE: loop exit
PB: predicated region body
PF: predicated region fallthrough
CT: control target
= control target key end

     0   :  { %6 = vsyncpa [#allocation3], 0  ;;  %s126_s0 = inlined_call_operand.hbm [shape: f32[1,2048], index: 0, kind: input, shape index: {}, may-alias: {0,1}]   ;;  %s127_s1 = inlined_call_operand.hbm [shape: f32[1,2048], index: 1, kind: output, shape index: {}, may-alias: {0,1}]  }
   0x1   :  { %7 = vsyncpa [#allocation4], 0  ;;  %s90_s6 = smov [#allocation2]   ;;  %s42_s10 = scalar_lea.hbm %s126_s0, 256 }
   0x2   :  { %s14_s7 = sshll.u32 %s90_s6, 4  ;;  %p43_p0 = scmp.ne.s32.totalorder %s126_s0, %s42_s10  ;;  %s15_s7 = int_to_ptr.vmem [resolvable:$true] %s14_s7 }
   0x3   :  { %p46_p1 = scmp.lt.u32.totalorder %s42_s10, %s126_s0 }
   0x5   :  { %p48_p2 = pnand %p46_p1, %p43_p0 }
   0x7   :  { %51 = shalt.err (!%p48_p2)
}
   0x8   :  { %s52_s15 = scalar_lea.vmem %s15_s7, 256  ;;  %p57_p4 = scmp.lt.s32.totalorder %s15_s7, %s15_s7 }
   0x9   :  { %p53_p3 = scmp.ne.s32.totalorder %s15_s7, %s52_s15  ;;  %p58_p5 = scmp.lt.s32.totalorder %s52_s15, %s52_s15 }
   0xb   :  { %p59_p6 = por %p58_p5, %p57_p4 }
   0xd   :  { %p60_p7 = pnand %p59_p6, %p53_p3 }
   0xf   :  { %63 = shalt.err (!%p60_p7)
}
  0x10   :  { %17 = dma.hbm_to_vmem [thread:$0]  %s126_s0, 256, %s15_s7, [#allocation3]  }
  0x11   :  { %86 = dma.done.wait [#allocation3], 256  }
  0x12   :  { %87 = vsyncadd [#allocation3], 4294967040  ;;  %s91_s18 = smov [#allocation5]   ;;  %v21_v0 = vld [vmem:[#allocation2] sm:$0xff]  ;;  %v22_v1 = vld [vmem:[#allocation2 + $0x8] sm:$0xff] }
  0x13   :  { %s31_s19 = sshll.u32 %s91_s18, 4  ;;  %23 = vst [vmem:[#allocation5] sm:$0xff] %v21_v0  ;;  %24 = vst [vmem:[#allocation5 + $0x8] sm:$0xff] %v22_v1  ;;  %s32_s19 = int_to_ptr.vmem [resolvable:$true] %s31_s19 }
  0x14   :  { %s64_s20 = scalar_lea.vmem %s32_s19, 256  ;;  %p69_p9 = scmp.lt.s32.totalorder %s32_s19, %s32_s19 }
  0x15   :  { %p65_p8 = scmp.ne.s32.totalorder %s32_s19, %s64_s20  ;;  %p70_p10 = scmp.lt.s32.totalorder %s64_s20, %s64_s20 }
  0x17   :  { %p71_p11 = por %p70_p10, %p69_p9 }
  0x19   :  { %p72_p12 = pnand %p71_p11, %p65_p8 }
  0x1b   :  { %75 = shalt.err (!%p72_p12)
}
  0x1c   :  { %s76_s0 = scalar_lea.hbm %s127_s1, 256 }
  0x1d   :  { %p77_p13 = scmp.ne.s32.totalorder %s127_s1, %s76_s0  ;;  %p80_p0 = scmp.lt.u32.totalorder %s76_s0, %s127_s1 }
  0x1f   :  { %p82_p1 = pnand %p80_p0, %p77_p13 }
  0x21   :  { %85 = shalt.err (!%p82_p1)
}
  0x22   :  { %34 = dma.vmem_to_hbm [thread:$0]  %s32_s19, 256, %s127_s1, [#allocation4]  }
  0x23   :  { %88 = dma.done.wait [#allocation4], 256  }
  0x24   :  { %89 = vsyncadd [#allocation4], 4294967040 }
  0x25   :  { %38 = vsyncpa [#allocation3], 1 }
  0x26   :  { %39 = vsyncpa [#allocation4], 1 }

</bundles_post_ra>
